<compile_context>
chip_gen: v7x
topology: tpu7x:2x2x1
jax: 0.10.0
libtpu: 0.0.40
codegen_flags: <defaults>
</compile_context>

<pallas_src>
import jax
import jax.numpy as jnp
from jax.experimental import pallas as pl
from jax.experimental.pallas import tpu as pltpu

NEG_SLOPE = 0.01               # torch.nn.LeakyReLU() default
MXU_DTYPE = jnp.bfloat16       # matmul operand dtype (f32 accumulation)


# ----------------------------------------------------------------------------
# Wrapper-side weight transform: fold the 3x3 kernel's W taps (and the W zero
# padding) into a block-banded (W*C, W*C) matrix per kernel row dy, so each conv
# is 3 lane-dense matmuls  (B*H, W*C) @ (W*C, W*C).
#   Wband[dy][wi*C+ci, wo*C+co] = w[dy, wi-wo+1, ci, co]  if |wi-wo| <= 1 else 0
# ----------------------------------------------------------------------------
def _band_weights(w_hwio, width, dtype):
    kh, kw, cin, cout = w_hwio.shape
    assert (kh, kw) == (3, 3) and cin == cout, "expects 3x3 conv with Cin == Cout"
    wi = jnp.arange(width)[:, None]
    wo = jnp.arange(width)[None, :]
    kx = wi - wo + 1                                   # (W, W)
    valid = (kx >= 0) & (kx <= 2)
    kx_c = jnp.clip(kx, 0, 2)
    band = w_hwio[:, kx_c, :, :]                       # (3, W, W, Cin, Cout) [ky, wi, wo, ci, co]
    band = jnp.where(valid[None, :, :, None, None], band, 0.0)
    band = band.transpose(0, 1, 3, 2, 4)               # (ky, wi, ci, wo, co)
    return band.reshape(3, width * cin, width * cout).astype(dtype)


# ----------------------------------------------------------------------------
# Fused kernel: one block of NB images per grid step, lane-dense (W*C) layout.
#   x_ref   : (NB, H, W*C)        f32 input (residual source)
#   wb1_ref : (3,  W*C, W*C)      conv1 banded weights (bf16, resident)
#   b1_ref  : (1,  W*C)           conv1 bias, tiled over W (f32)
#   wb2_ref : (3,  W*C, W*C)      conv2 banded weights
#   b2_ref  : (1,  W*C)           conv2 bias
#   o_ref   : (NB, H, W*C)        f32 output
#   xp_ref  : (NB, H+2, W*C)      bf16 scratch with an H halo, reused for both convs
# ----------------------------------------------------------------------------
def _residual_block_kernel(x_ref, wb1_ref, b1_ref, wb2_ref, b2_ref, o_ref, xp_ref):
    nb, hh, wc = x_ref.shape
    m = nb * hh
    cdt = xp_ref.dtype

    # Zero ONLY the 2 halo rows per image (tiny; interior stores never touch them).
    # Done every step so correctness does not depend on grid sharding / megacore.
    zero_row = jnp.zeros((nb, 1, wc), cdt)
    xp_ref[:, 0:1, :] = zero_row
    xp_ref[:, hh + 1:hh + 2, :] = zero_row

    xv = x_ref[...]                                     # residual kept in vregs (f32)
    xp_ref[:, 1:hh + 1, :] = xv.astype(cdt)             # lane-aligned interior store

    def conv(w_ref):
        # 3 dense MXU pushes: (NB*H, W*C) @ (W*C, W*C), f32 accumulation.
        acc = jnp.zeros((m, wc), jnp.float32)
        for dy in range(3):                             # static unroll
            lhs = xp_ref[:, dy:dy + hh, :].reshape(m, wc)
            acc = acc + jnp.dot(lhs, w_ref[dy], preferred_element_type=jnp.float32)
        return acc

    # conv1 + bias + LeakyReLU   (f32 elementwise on the VPU — safe on v5e)
    mid = conv(wb1_ref) + b1_ref[...]
    mid = jnp.where(mid > 0, mid, NEG_SLOPE * mid)

    # Reuse the SAME padded scratch for conv2's input (halo rows stay zero).
    xp_ref[:, 1:hh + 1, :] = mid.reshape(nb, hh, wc).astype(cdt)

    # conv2 + bias + residual, single lane-dense store.
    out = conv(wb2_ref) + b2_ref[...] + xv.reshape(m, wc)
    o_ref[...] = out.reshape(nb, hh, wc).astype(o_ref.dtype)


# ----------------------------------------------------------------------------
# Wrapper: NCHW interface (matches the PyTorch module), lane-dense compute.
#   params["w1"], params["w2"] : (3, 3, Cin, Cout)   (HWIO)
#   params["b1"], params["b2"] : (C,)
# ----------------------------------------------------------------------------
def residual_block_forward(x_nchw, params):
    b, c, h, w = x_nchw.shape
    wc = w * c

    # NCHW -> NHWC -> fold (W, C) onto the lane axis: (B, H, W*C).  Layout glue only.
    x = jnp.transpose(x_nchw, (0, 2, 3, 1)).reshape(b, h, wc)

    wb1 = _band_weights(params["w1"], w, MXU_DTYPE)                 # (3, W*C, W*C)
    wb2 = _band_weights(params["w2"], w, MXU_DTYPE)
    b1 = jnp.tile(params["b1"].astype(jnp.float32), w).reshape(1, wc)
    b2 = jnp.tile(params["b2"].astype(jnp.float32), w).reshape(1, wc)

    # Images per grid step: fold the whole small batch into one step; for larger even
    # batches keep 2 grid steps so both v7x TensorCores are busy (parallel axis).
    if b >= 4 and b % 2 == 0:
        nb = b // 2
    else:
        nb = b
    grid = (b // nb,)

    img_spec = pl.BlockSpec((nb, h, wc), lambda i: (i, 0, 0))
    w_spec = pl.BlockSpec((3, wc, wc), lambda i: (0, 0, 0))         # resident across grid
    bias_spec = pl.BlockSpec((1, wc), lambda i: (0, 0))

    out = pl.pallas_call(
        _residual_block_kernel,
        out_shape=jax.ShapeDtypeStruct((b, h, wc), x.dtype),
        grid=grid,
        in_specs=[img_spec, w_spec, bias_spec, w_spec, bias_spec],
        out_specs=img_spec,
        scratch_shapes=[pltpu.VMEM((nb, h + 2, wc), MXU_DTYPE)],
        compiler_params=pltpu.CompilerParams(
            dimension_semantics=("parallel",),
            # 32 MiB: ample on v5e/v6e (128 MiB VMEM) and only half of v7x's 64 MiB/TC.
            vmem_limit_bytes=32 * 1024 * 1024),
    )(x, wb1, b1, wb2, b2)

    # (B, H, W*C) -> NHWC -> NCHW.  Layout glue only.
    return jnp.transpose(out.reshape(b, h, w, c), (0, 3, 1, 2))


# ----------------------------------------------------------------------------
# Pure-JAX reference (f32) for a correctness sanity check.
# ----------------------------------------------------------------------------
def _reference(x, params):
    dn = ('NCHW', 'HWIO', 'NCHW')
    pad = ((1, 1), (1, 1))
    y = jax.lax.conv_general_dilated(x, params["w1"], (1, 1), pad,
                                     dimension_numbers=dn)
    y = y + params["b1"].reshape(1, -1, 1, 1)
    y = jnp.where(y > 0, y, NEG_SLOPE * y)
    y = jax.lax.conv_general_dilated(y, params["w2"], (1, 1), pad,
                                     dimension_numbers=dn)
    y = y + params["b2"].reshape(1, -1, 1, 1)
    return x + y


if __name__ == "__main__":
    b, c, h, w = 2, 8, 16, 16          # batch=2, in_features=8, 16x16 spatial (W*C = 128)

    key = jax.random.PRNGKey(0)
    kx, k1, k2, k3, k4 = jax.random.split(key, 5)
    x = jax.random.normal(kx, (b, c, h, w), jnp.float32)
    params = {
        "w1": jax.random.normal(k1, (3, 3, c, c), jnp.float32) * 0.1,
        "b1": jax.random.normal(k2, (c,), jnp.float32) * 0.1,
        "w2": jax.random.normal(k3, (3, 3, c, c), jnp.float32) * 0.1,
        "b2": jax.random.normal(k4, (c,), jnp.float32) * 0.1,
    }

    fwd = jax.jit(residual_block_forward)
    out = jax.block_until_ready(fwd(x, params))

    assert out.shape == (b, c, h, w), out.shape
    assert bool(jnp.all(jnp.isfinite(out)))

    ref = _reference(x, params)
    err = float(jnp.max(jnp.abs(out - ref)))
    assert err < 5e-2, f"max abs err vs reference: {err}"   # bf16-matmul tolerance

    print("KERNEL_OK")
</pallas_src>

<mosaic_0001>
module attributes {stable_mosaic.version = 11 : i64} {
  func.func @_residual_block_kernel(%arg0: i32, %arg1: memref<2x16x128xf32, #tpu.memory_space<vmem>>, %arg2: memref<3x128x128xbf16, #tpu.memory_space<vmem>>, %arg3: memref<1x128xf32, #tpu.memory_space<vmem>>, %arg4: memref<3x128x128xbf16, #tpu.memory_space<vmem>>, %arg5: memref<1x128xf32, #tpu.memory_space<vmem>>, %arg6: memref<2x16x128xf32, #tpu.memory_space<vmem>>, %arg7: memref<2x18x128xbf16, #tpu.memory_space<vmem>>) attributes {dimension_semantics = [#tpu.dimension_semantics<parallel>], iteration_bounds = array<i64: 1>, scalar_prefetch = 0 : i64, scratch_operands = 1 : i64, tpu.core_type = #tpu.core_type<tc>, window_params = [{transform_indices = @transform_0, window_bounds = array<i64: 2, 16, 128>}, {pipeline_mode = #tpu.pipeline_mode<synchronous>, transform_indices = @transform_1, window_bounds = array<i64: 3, 128, 128>}, {pipeline_mode = #tpu.pipeline_mode<synchronous>, transform_indices = @transform_2, window_bounds = array<i64: 1, 128>}, {pipeline_mode = #tpu.pipeline_mode<synchronous>, transform_indices = @transform_3, window_bounds = array<i64: 3, 128, 128>}, {pipeline_mode = #tpu.pipeline_mode<synchronous>, transform_indices = @transform_4, window_bounds = array<i64: 1, 128>}, {transform_indices = @transform_5, window_bounds = array<i64: 2, 16, 128>}]} {
    %cst = arith.constant 0.000000e+00 : bf16
    %0 = vector.broadcast %cst : bf16 to vector<2x1x128xbf16>
    %c0 = arith.constant 0 : index
    %c0_0 = arith.constant 0 : index
    %c0_1 = arith.constant 0 : index
    %1 = vector.load %arg7[%c0, %c0_0, %c0_1] : memref<2x18x128xbf16, #tpu.memory_space<vmem>>, vector<2x1x128xbf16>
    tpu.vector_store %arg7[%c0, %c0_0, %c0_1], %0 {strides = array<i32>} : memref<2x18x128xbf16, #tpu.memory_space<vmem>>, vector<2x1x128xbf16>,
    %c0_2 = arith.constant 0 : index
    %c17 = arith.constant 17 : index
    %c0_3 = arith.constant 0 : index
    %2 = vector.load %arg7[%c0_2, %c17, %c0_3] : memref<2x18x128xbf16, #tpu.memory_space<vmem>>, vector<2x1x128xbf16>
    tpu.vector_store %arg7[%c0_2, %c17, %c0_3], %0 {strides = array<i32>} : memref<2x18x128xbf16, #tpu.memory_space<vmem>>, vector<2x1x128xbf16>,
    %c0_4 = arith.constant 0 : index
    %c0_5 = arith.constant 0 : index
    %c0_6 = arith.constant 0 : index
    %3 = vector.load %arg1[%c0_4, %c0_5, %c0_6] : memref<2x16x128xf32, #tpu.memory_space<vmem>>, vector<2x16x128xf32>
    %4 = arith.truncf %3 : vector<2x16x128xf32> to vector<2x16x128xbf16>
    %c0_7 = arith.constant 0 : index
    %c1 = arith.constant 1 : index
    %c0_8 = arith.constant 0 : index
    %5 = vector.load %arg7[%c0_7, %c1, %c0_8] : memref<2x18x128xbf16, #tpu.memory_space<vmem>>, vector<2x16x128xbf16>
    tpu.vector_store %arg7[%c0_7, %c1, %c0_8], %4 {strides = array<i32>} : memref<2x18x128xbf16, #tpu.memory_space<vmem>>, vector<2x16x128xbf16>,
    %cst_9 = arith.constant 0.000000e+00 : f32
    %6 = vector.broadcast %cst_9 : f32 to vector<32x128xf32>
    %c0_10 = arith.constant 0 : index
    %c0_11 = arith.constant 0 : index
    %c0_12 = arith.constant 0 : index
    %7 = vector.load %arg7[%c0_10, %c0_11, %c0_12] : memref<2x18x128xbf16, #tpu.memory_space<vmem>>, vector<2x16x128xbf16>
    %8 = vector.shape_cast %7 : vector<2x16x128xbf16> to vector<32x128xbf16>
    %c0_13 = arith.constant 0 : index
    %c0_14 = arith.constant 0 : index
    %c0_15 = arith.constant 0 : index
    %9 = vector.load %arg2[%c0_13, %c0_14, %c0_15] : memref<3x128x128xbf16, #tpu.memory_space<vmem>>, vector<1x128x128xbf16>
    %10 = vector.shape_cast %9 : vector<1x128x128xbf16> to vector<128x128xbf16>
    %cst_16 = arith.constant dense<0.000000e+00> : vector<32x128xf32>
    %11 = tpu.matmul %8, %10, %cst_16 {dimension_numbers = #tpu.dot_dimension_numbers<[1], [0], [0], [1], [0, 0, 1, 1], [], []>} : vector<32x128xbf16>, vector<128x128xbf16>, vector<32x128xf32> -> vector<32x128xf32>
    %12 = arith.addf %6, %11 : vector<32x128xf32>
    %c0_17 = arith.constant 0 : index
    %c1_18 = arith.constant 1 : index
    %c0_19 = arith.constant 0 : index
    %13 = vector.load %arg7[%c0_17, %c1_18, %c0_19] : memref<2x18x128xbf16, #tpu.memory_space<vmem>>, vector<2x16x128xbf16>
    %14 = vector.shape_cast %13 : vector<2x16x128xbf16> to vector<32x128xbf16>
    %c1_20 = arith.constant 1 : index
    %c0_21 = arith.constant 0 : index
    %c0_22 = arith.constant 0 : index
    %15 = vector.load %arg2[%c1_20, %c0_21, %c0_22] : memref<3x128x128xbf16, #tpu.memory_space<vmem>>, vector<1x128x128xbf16>
    %16 = vector.shape_cast %15 : vector<1x128x128xbf16> to vector<128x128xbf16>
    %cst_23 = arith.constant dense<0.000000e+00> : vector<32x128xf32>
    %17 = tpu.matmul %14, %16, %cst_23 {dimension_numbers = #tpu.dot_dimension_numbers<[1], [0], [0], [1], [0, 0, 1, 1], [], []>} : vector<32x128xbf16>, vector<128x128xbf16>, vector<32x128xf32> -> vector<32x128xf32>
    %18 = arith.addf %12, %17 : vector<32x128xf32>
    %c0_24 = arith.constant 0 : index
    %c2 = arith.constant 2 : index
    %c0_25 = arith.constant 0 : index
    %19 = vector.load %arg7[%c0_24, %c2, %c0_25] : memref<2x18x128xbf16, #tpu.memory_space<vmem>>, vector<2x16x128xbf16>
    %20 = vector.shape_cast %19 : vector<2x16x128xbf16> to vector<32x128xbf16>
    %c2_26 = arith.constant 2 : index
    %c0_27 = arith.constant 0 : index
    %c0_28 = arith.constant 0 : index
    %21 = vector.load %arg2[%c2_26, %c0_27, %c0_28] : memref<3x128x128xbf16, #tpu.memory_space<vmem>>, vector<1x128x128xbf16>
    %22 = vector.shape_cast %21 : vector<1x128x128xbf16> to vector<128x128xbf16>
    %cst_29 = arith.constant dense<0.000000e+00> : vector<32x128xf32>
    %23 = tpu.matmul %20, %22, %cst_29 {dimension_numbers = #tpu.dot_dimension_numbers<[1], [0], [0], [1], [0, 0, 1, 1], [], []>} : vector<32x128xbf16>, vector<128x128xbf16>, vector<32x128xf32> -> vector<32x128xf32>
    %24 = arith.addf %18, %23 : vector<32x128xf32>
    %c0_30 = arith.constant 0 : index
    %c0_31 = arith.constant 0 : index
    %25 = vector.load %arg3[%c0_30, %c0_31] : memref<1x128xf32, #tpu.memory_space<vmem>>, vector<1x128xf32>
    %26 = vector.broadcast %25 : vector<1x128xf32> to vector<32x128xf32>
    %27 = arith.addf %24, %26 : vector<32x128xf32>
    %cst_32 = arith.constant 0.000000e+00 : f32
    %28 = vector.broadcast %cst_32 : f32 to vector<32x128xf32>
    %29 = arith.cmpf ogt, %27, %28 : vector<32x128xf32>
    %cst_33 = arith.constant 0.00999999977 : f32
    %30 = vector.broadcast %cst_33 : f32 to vector<32x128xf32>
    %31 = arith.mulf %30, %27 : vector<32x128xf32>
    %32 = arith.select %29, %27, %31 : vector<32x128xi1>, vector<32x128xf32>
    %33 = vector.shape_cast %32 : vector<32x128xf32> to vector<2x16x128xf32>
    %34 = arith.truncf %33 : vector<2x16x128xf32> to vector<2x16x128xbf16>
    %c0_34 = arith.constant 0 : index
    %c1_35 = arith.constant 1 : index
    %c0_36 = arith.constant 0 : index
    %35 = vector.load %arg7[%c0_34, %c1_35, %c0_36] : memref<2x18x128xbf16, #tpu.memory_space<vmem>>, vector<2x16x128xbf16>
    tpu.vector_store %arg7[%c0_34, %c1_35, %c0_36], %34 {strides = array<i32>} : memref<2x18x128xbf16, #tpu.memory_space<vmem>>, vector<2x16x128xbf16>,
    %cst_37 = arith.constant 0.000000e+00 : f32
    %36 = vector.broadcast %cst_37 : f32 to vector<32x128xf32>
    %c0_38 = arith.constant 0 : index
    %c0_39 = arith.constant 0 : index
    %c0_40 = arith.constant 0 : index
    %37 = vector.load %arg7[%c0_38, %c0_39, %c0_40] : memref<2x18x128xbf16, #tpu.memory_space<vmem>>, vector<2x16x128xbf16>
    %38 = vector.shape_cast %37 : vector<2x16x128xbf16> to vector<32x128xbf16>
    %c0_41 = arith.constant 0 : index
    %c0_42 = arith.constant 0 : index
    %c0_43 = arith.constant 0 : index
    %39 = vector.load %arg4[%c0_41, %c0_42, %c0_43] : memref<3x128x128xbf16, #tpu.memory_space<vmem>>, vector<1x128x128xbf16>
    %40 = vector.shape_cast %39 : vector<1x128x128xbf16> to vector<128x128xbf16>
    %cst_44 = arith.constant dense<0.000000e+00> : vector<32x128xf32>
    %41 = tpu.matmul %38, %40, %cst_44 {dimension_numbers = #tpu.dot_dimension_numbers<[1], [0], [0], [1], [0, 0, 1, 1], [], []>} : vector<32x128xbf16>, vector<128x128xbf16>, vector<32x128xf32> -> vector<32x128xf32>
    %42 = arith.addf %36, %41 : vector<32x128xf32>
    %c0_45 = arith.constant 0 : index
    %c1_46 = arith.constant 1 : index
    %c0_47 = arith.constant 0 : index
    %43 = vector.load %arg7[%c0_45, %c1_46, %c0_47] : memref<2x18x128xbf16, #tpu.memory_space<vmem>>, vector<2x16x128xbf16>
    %44 = vector.shape_cast %43 : vector<2x16x128xbf16> to vector<32x128xbf16>
    %c1_48 = arith.constant 1 : index
    %c0_49 = arith.constant 0 : index
    %c0_50 = arith.constant 0 : index
    %45 = vector.load %arg4[%c1_48, %c0_49, %c0_50] : memref<3x128x128xbf16, #tpu.memory_space<vmem>>, vector<1x128x128xbf16>
    %46 = vector.shape_cast %45 : vector<1x128x128xbf16> to vector<128x128xbf16>
    %cst_51 = arith.constant dense<0.000000e+00> : vector<32x128xf32>
    %47 = tpu.matmul %44, %46, %cst_51 {dimension_numbers = #tpu.dot_dimension_numbers<[1], [0], [0], [1], [0, 0, 1, 1], [], []>} : vector<32x128xbf16>, vector<128x128xbf16>, vector<32x128xf32> -> vector<32x128xf32>
    %48 = arith.addf %42, %47 : vector<32x128xf32>
    %c0_52 = arith.constant 0 : index
    %c2_53 = arith.constant 2 : index
    %c0_54 = arith.constant 0 : index
    %49 = vector.load %arg7[%c0_52, %c2_53, %c0_54] : memref<2x18x128xbf16, #tpu.memory_space<vmem>>, vector<2x16x128xbf16>
    %50 = vector.shape_cast %49 : vector<2x16x128xbf16> to vector<32x128xbf16>
    %c2_55 = arith.constant 2 : index
    %c0_56 = arith.constant 0 : index
    %c0_57 = arith.constant 0 : index
    %51 = vector.load %arg4[%c2_55, %c0_56, %c0_57] : memref<3x128x128xbf16, #tpu.memory_space<vmem>>, vector<1x128x128xbf16>
    %52 = vector.shape_cast %51 : vector<1x128x128xbf16> to vector<128x128xbf16>
    %cst_58 = arith.constant dense<0.000000e+00> : vector<32x128xf32>
    %53 = tpu.matmul %50, %52, %cst_58 {dimension_numbers = #tpu.dot_dimension_numbers<[1], [0], [0], [1], [0, 0, 1, 1], [], []>} : vector<32x128xbf16>, vector<128x128xbf16>, vector<32x128xf32> -> vector<32x128xf32>
    %54 = arith.addf %48, %53 : vector<32x128xf32>
    %c0_59 = arith.constant 0 : index
    %c0_60 = arith.constant 0 : index
    %55 = vector.load %arg5[%c0_59, %c0_60] : memref<1x128xf32, #tpu.memory_space<vmem>>, vector<1x128xf32>
    %56 = vector.broadcast %55 : vector<1x128xf32> to vector<32x128xf32>
    %57 = arith.addf %54, %56 : vector<32x128xf32>
    %58 = vector.shape_cast %3 : vector<2x16x128xf32> to vector<32x128xf32>
    %59 = arith.addf %57, %58 : vector<32x128xf32>
    %60 = vector.shape_cast %59 : vector<32x128xf32> to vector<2x16x128xf32>
    %c0_61 = arith.constant 0 : index
    %c0_62 = arith.constant 0 : index
    %c0_63 = arith.constant 0 : index
    %61 = vector.load %arg6[%c0_61, %c0_62, %c0_63] : memref<2x16x128xf32, #tpu.memory_space<vmem>>, vector<2x16x128xf32>
    tpu.vector_store %arg6[%c0_61, %c0_62, %c0_63], %60 {strides = array<i32>} : memref<2x16x128xf32, #tpu.memory_space<vmem>>, vector<2x16x128xf32>,
    return
  }
  func.func @transform_0(%arg0: i32) -> (i32, i32, i32) {
    %c0_i32 = arith.constant 0 : i32
    %c0_i32_0 = arith.constant 0 : i32
    %c0_i32_1 = arith.constant 0 : i32
    return %arg0, %c0_i32, %c0_i32_0 : i32, i32, i32
  }
  func.func @transform_1(%arg0: i32) -> (i32, i32, i32) {
    %c0_i32 = arith.constant 0 : i32
    %c0_i32_0 = arith.constant 0 : i32
    %c0_i32_1 = arith.constant 0 : i32
    %c0_i32_2 = arith.constant 0 : i32
    return %c0_i32, %c0_i32_0, %c0_i32_1 : i32, i32, i32
  }
  func.func @transform_2(%arg0: i32) -> (i32, i32) {
    %c0_i32 = arith.constant 0 : i32
    %c0_i32_0 = arith.constant 0 : i32
    %c0_i32_1 = arith.constant 0 : i32
    return %c0_i32, %c0_i32_0 : i32, i32
  }
  func.func @transform_3(%arg0: i32) -> (i32, i32, i32) {
    %c0_i32 = arith.constant 0 : i32
    %c0_i32_0 = arith.constant 0 : i32
    %c0_i32_1 = arith.constant 0 : i32
    %c0_i32_2 = arith.constant 0 : i32
    return %c0_i32, %c0_i32_0, %c0_i32_1 : i32, i32, i32
  }
  func.func @transform_4(%arg0: i32) -> (i32, i32) {
    %c0_i32 = arith.constant 0 : i32
    %c0_i32_0 = arith.constant 0 : i32
    %c0_i32_1 = arith.constant 0 : i32
    return %c0_i32, %c0_i32_0 : i32, i32
  }
  func.func @transform_5(%arg0: i32) -> (i32, i32, i32) {
    %c0_i32 = arith.constant 0 : i32
    %c0_i32_0 = arith.constant 0 : i32
    %c0_i32_1 = arith.constant 0 : i32
    return %arg0, %c0_i32, %c0_i32_0 : i32, i32, i32
  }
}

</mosaic_0001>

<bundles_post_ra>
// kernel: tile.13
= control target key start
LH: loop header
LB: loop body
LE: loop exit
PB: predicated region body
PF: predicated region fallthrough
CT: control target
= control target key end

     0   :  { %s28_s0 = inlined_call_operand.vmem [shape: f32[8], index: 0, kind: input, shape index: {}]   ;;  %s29_s1 = inlined_call_operand.vmem [shape: f32[16,8], index: 1, kind: output, shape index: {}]  }
   0x1   :  { %v4_v0 = vld [vmem:[%s28_s0] ss:$0 sm:$0xff] }
   0x2   :  { %5 = vst [vmem:[%s29_s1] sm:$0xff] %v4_v0  ;;  %8 = vst [vmem:[%s29_s1 + $0x8] sm:$0xff] %v4_v0 }

// kernel: tile.14
= control target key start
LH: loop header
LB: loop body
LE: loop exit
PB: predicated region body
PF: predicated region fallthrough
CT: control target
= control target key end

     0   :  { %s131_s10 = smov 120   ;;  %s132_s11 = smov 104   ;;  %vm3_vm0 = vcmask 64512   ;;  %vm9_vm1 = vcmask 1048512   ;;  %vm15_vm2 = vcmask 982912   ;;  %vm21_vm3 = vcmask 917312   ;;  %s207_s0 = inlined_call_operand.vmem [shape: f32[16,8], index: 0, kind: input, shape index: {}]   ;;  %s208_s1 = inlined_call_operand.vmem [shape: f32[1,128], index: 1, kind: output, shape index: {}]  }
   0x1   :  { %v101_v0 = vld [vmem:[%s207_s0 + $0xf] sm:$0x1]   ;;  %v103_v1 = vld [vmem:[%s207_s0 + $0xd] sm:$0x1]   ;;  %v102_v2 = vld [vmem:[%s207_s0 + $0xe] sm:$0x1]  }
   0x2   :  { %7 = vrot.lane.b32.xlu0 %v101_v0, %s131_s10  ;;  %19 = vrot.lane.b32.xlu1 %v103_v1, %s132_s11  ;;  %v104_v3 = vld [vmem:[%s207_s0 + $0xc] sm:$0x1]   ;;  %s133_s16 = smov 112   ;;  %s134_s17 = smov 96   ;;  %v105_v4 = vld [vmem:[%s207_s0 + $0xb] sm:$0x1]  }
   0x3   :  { %v106_v5 = vld [vmem:[%s207_s0 + $0xa] sm:$0x1]   ;;  %v2_v6 = vld [vmem:[%s207_s0] sm:$0x1]   ;;  %s135_s24 = smov 88   ;;  %s136_s25 = smov 80  }
   0x4   :  { %4 = vst.msk [vmem:[#allocation0] sm:$0x1] %vm3_vm0, %v2_v6   ;;  %v107_v7 = vld [vmem:[%s207_s0 + $0x9] sm:$0x1]   ;;  %v108_v8 = vld [vmem:[%s207_s0 + $0x8] sm:$0x1]  }
   0x5   :  { %s137_s30 = smov 72   ;;  %s138_s2 = smov 64   ;;  %v109_v9 = vld [vmem:[%s207_s0 + $0x7] sm:$0x1]   ;;  %v110_v10 = vld [vmem:[%s207_s0 + $0x6] sm:$0x1]  }
   0x6   :  { %13 = vrot.lane.b32.xlu0 %v102_v2, %s133_s16  ;;  %25 = vrot.lane.b32.xlu1 %v104_v3, %s134_s17  ;;  %s139_s7 = smov 56   ;;  %s140_s8 = smov 48   ;;  %v111_v11 = vld [vmem:[%s207_s0 + $0x5] sm:$0x1]   ;;  %v112_v12 = vld [vmem:[%s207_s0 + $0x4] sm:$0x1]  }
   0x7   :  { %s141_s13 = smov 40   ;;  %s142_s14 = smov 32   ;;  %v113_v13 = vld [vmem:[%s207_s0 + $0x3] sm:$0x1]   ;;  %v114_v14 = vld [vmem:[%s207_s0 + $0x2] sm:$0x1]  }
   0x8   :  { %s143_s19 = smov 24   ;;  %s144_s20 = smov 16   ;;  %v115_v15 = vld [vmem:[%s207_s0 + $0x1] sm:$0x1]   ;;  %vm27_vm4 = vcmask 851712   ;;  %vm33_vm5 = vcmask 786112  }
   0x9   :  { %s145_s0 = smov 8   ;;  %vm39_vm6 = vcmask 720512   ;;  %vm45_vm7 = vcmask 654912   ;;  %vm51_vm8 = vcmask 589312   ;;  %vm57_vm9 = vcmask 523712  }
   0xa   :  { %31 = vrot.lane.b32.xlu0 %v105_v4, %s135_s24  ;;  %37 = vrot.lane.b32.xlu1 %v106_v5, %s136_s25  ;;  %vm63_vm10 = vcmask 458112   ;;  %vm69_vm11 = vcmask 392512   ;;  %vm75_vm12 = vcmask 326912   ;;  %vm81_vm13 = vcmask 261312  }
   0xb   :  { %vm87_vm14 = vcmask 195712   ;;  %vm93_vm15 = vcmask 130112  }
   0xe   :  { %43 = vrot.lane.b32.xlu0 %v107_v7, %s137_s30  ;;  %49 = vrot.lane.b32.xlu1 %v108_v8, %s138_s2 }
  0x12   :  { %55 = vrot.lane.b32.xlu0 %v109_v9, %s139_s7  ;;  %61 = vrot.lane.b32.xlu1 %v110_v10, %s140_s8 }
  0x16   :  { %67 = vrot.lane.b32.xlu0 %v111_v11, %s141_s13  ;;  %73 = vrot.lane.b32.xlu1 %v112_v12, %s142_s14 }
  0x1a   :  { %79 = vrot.lane.b32.xlu0 %v113_v13, %s143_s19  ;;  %85 = vrot.lane.b32.xlu1 %v114_v14, %s144_s20 }
  0x1e   :  { %91 = vrot.lane.b32.xlu0 %v115_v15, %s145_s0 }
  0x74   :  { %v8_v16 = vpop.permute.xlu0 %7   ;;  %v20_v17 = vpop.permute.xlu1 %19  }
  0x75   :  { %10 = vst.msk [vmem:[#allocation0] sm:$0x1] %vm9_vm1, %v8_v16  }
  0x78   :  { %v14_v18 = vpop.permute.xlu0 %13   ;;  %v26_v19 = vpop.permute.xlu1 %25  }
  0x79   :  { %16 = vst.msk [vmem:[#allocation0] sm:$0x1] %vm15_vm2, %v14_v18  }
  0x7a   :  { %22 = vst.msk [vmem:[#allocation0] sm:$0x1] %vm21_vm3, %v20_v17  }
  0x7b   :  { %28 = vst.msk [vmem:[#allocation0] sm:$0x1] %vm27_vm4, %v26_v19  }
  0x7c   :  { %v32_v20 = vpop.permute.xlu0 %31   ;;  %v38_v21 = vpop.permute.xlu1 %37  }
  0x7d   :  { %34 = vst.msk [vmem:[#allocation0] sm:$0x1] %vm33_vm5, %v32_v20  }
  0x7e   :  { %40 = vst.msk [vmem:[#allocation0] sm:$0x1] %vm39_vm6, %v38_v21  }
  0x80   :  { %v44_v22 = vpop.permute.xlu0 %43   ;;  %v50_v23 = vpop.permute.xlu1 %49  }
  0x81   :  { %46 = vst.msk [vmem:[#allocation0] sm:$0x1] %vm45_vm7, %v44_v22  }
  0x82   :  { %52 = vst.msk [vmem:[#allocation0] sm:$0x1] %vm51_vm8, %v50_v23  }
  0x84   :  { %v56_v24 = vpop.permute.xlu0 %55   ;;  %v62_v25 = vpop.permute.xlu1 %61  }
  0x85   :  { %58 = vst.msk [vmem:[#allocation0] sm:$0x1] %vm57_vm9, %v56_v24  }
  0x86   :  { %64 = vst.msk [vmem:[#allocation0] sm:$0x1] %vm63_vm10, %v62_v25  }
  0x88   :  { %v68_v26 = vpop.permute.xlu0 %67   ;;  %v74_v27 = vpop.permute.xlu1 %73  }
  0x89   :  { %70 = vst.msk [vmem:[#allocation0] sm:$0x1] %vm69_vm11, %v68_v26  }
  0x8a   :  { %76 = vst.msk [vmem:[#allocation0] sm:$0x1] %vm75_vm12, %v74_v27  }
  0x8c   :  { %v80_v28 = vpop.permute.xlu0 %79   ;;  %v86_v29 = vpop.permute.xlu1 %85  }
  0x8d   :  { %82 = vst.msk [vmem:[#allocation0] sm:$0x1] %vm81_vm13, %v80_v28  }
  0x8e   :  { %88 = vst.msk [vmem:[#allocation0] sm:$0x1] %vm87_vm14, %v86_v29  }
  0x90   :  { %v92_v30 = vpop.permute.xlu0 %91  }
  0x91   :  { %94 = vst.msk [vmem:[#allocation0] sm:$0x1] %vm93_vm15, %v92_v30  }
  0x98   :  { %v98_v31 = vld [vmem:[#allocation0] sm:$0x1] }
  0x99   :  { %100 = vst [vmem:[%s208_s1] sm:$0x1] %v98_v31 }

// kernel: residual_block_forward.1
= control target key start
LH: loop header
LB: loop body
LE: loop exit
PB: predicated region body
PF: predicated region fallthrough
CT: control target
= control target key end

     0   :  { %vm21_vm0 = vcmask 1040384   ;;  %vm22_vm1 = vsmask.f32 256  ;;  %v24_v3 = vld [vmem:[#allocation2] sm:$0x1]  ;;  %vm96_vm5 = vcmask 1043456   ;;  %s1893_s1 = inlined_call_operand.vmem [shape: bf16[3,128,128], index: 1, kind: input, shape index: {}]   ;;  %s1894_s0 = inlined_call_operand.vmem [shape: f32[2,16,128], index: 0, kind: input, shape index: {}]   ;;  %s1895_s3 = inlined_call_operand.vmem [shape: bf16[3,128,128], index: 3, kind: input, shape index: {}]   ;;  %s1896_s2 = inlined_call_operand.vmem [shape: f32[1,128], index: 2, kind: input, shape index: {}]   ;;  %s1897_s4 = inlined_call_operand.vmem [shape: f32[1,128], index: 4, kind: input, shape index: {}]   ;;  %s1898_s5 = inlined_call_operand.vmem [shape: f32[2,16,128], index: 5, kind: output, shape index: {}]  }
   0x1   :  { %v1465_v0 = vld [vmem:[%s1893_s1 + $0x40] sm:$0xff]   ;;  %v1466_v1 = vld [vmem:[%s1893_s1 + $0x48] sm:$0xff]   ;;  %v1467_v2 = vld [vmem:[%s1893_s1 + $0x50] sm:$0xff]   ;;  %vm30_vm3 = vsmask.f32 7938  ;;  %vm422_vm12 = vcmask 1042432  }
   0x2   :  { %1329 = vmatprep.subr.bf16.mxu0 %v1465_v0  ;;  %v1468_v4 = vld [vmem:[%s1893_s1 + $0x58] sm:$0xff]   ;;  %vm1560_vm2 = vmand %vm21_vm0, %vm22_vm1  ;;  %v27_v6 = vld [vmem:[#allocation2 + $0xc] sm:$0x1]  ;;  %vm54_vm6 = vsmask.f32 4368  ;;  %vm423_vm13 = vcmask 1046532  }
   0x3   :  { %1330 = vmatpush3.bf16.msra.mxu0 %v1465_v0  ;;  %v32_v7 = vld [vmem:[#allocation2 + $0x8] sm:$0x1]  ;;  %v25_v8 = vsel %vm1560_vm2, 0, %v24_v3  ;;  %v28_v9 = vsel %vm1560_vm2, 0, %v27_v6  ;;  %vm1569_vm4 = vmand %vm21_vm0, %vm30_vm3  ;;  %v35_v11 = vld [vmem:[#allocation2 + $0x14] sm:$0x1] }
   0x4   :  { %1331 = vmatprep.subr.bf16.mxu0 %v1466_v1  ;;  %v1576_v12 = vld [vmem:[%s1894_s0] sm:$0xff]  ;;  %26 = vst [vmem:[#allocation2] sm:$0x1] %v25_v8  ;;  %29 = vst [vmem:[#allocation2 + $0xc] sm:$0x1] %v28_v9  ;;  %v33_v13 = vsel %vm1569_vm4, 0, %v32_v7 }
   0x5   :  { %v36_v14 = vsel %vm1569_vm4, 0, %v35_v11  ;;  %v1585_v15 = vld [vmem:[%s1894_s0 + $0x8] sm:$0xff]  ;;  %v1590_v16 = vld [vmem:[%s1894_s0 + $0x10] sm:$0xff]  ;;  %v1261_v17 = vpack.c.bf16 %v1576_v12, %v1576_v12  ;;  %v1469_v18 = vld [vmem:[%s1893_s1 + $0x60] sm:$0xff]   ;;  %34 = vst [vmem:[#allocation2 + $0x8] sm:$0x1] %v33_v13 }
   0x6   :  { %v1262_v19 = vpack.c.bf16 %v1585_v15, %v1585_v15  ;;  %v1263_v20 = vpack.c.bf16 %v1590_v16, %v1590_v16  ;;  %37 = vst [vmem:[#allocation2 + $0x14] sm:$0x1] %v36_v14  ;;  %v1604_v27 = vld [vmem:[%s1894_s0 + $0x18] sm:$0xff]  ;;  %vm1610_vm7 = vmand %vm96_vm5, %vm30_vm3  ;;  %v1470_v33 = vld [vmem:[%s1893_s1 + $0x68] sm:$0xff]   ;;  %vm134_vm9 = vsmask.f32 3328 }
   0x7   :  { %1332 = vmatpush3.bf16.msra.mxu0 %v1466_v1  ;;  %v57_v21 = vshrl.u32 %v1261_v17, 16  ;;  %v60_v22 = vshll.u32 %v1261_v17, 16  ;;  %v1264_v29 = vpack.c.bf16 %v1604_v27, %v1604_v27  ;;  %vm1619_vm8 = vmor %vm22_vm1, %vm54_vm6  ;;  %v1471_v52 = vld [vmem:[%s1893_s1 + $0x70] sm:$0xff]   ;;  %v1472_v57 = vld [vmem:[%s1893_s1 + $0x78] sm:$0xff]   ;;  %vm135_vm10 = vsmask.f32 7440 }
   0x8   :  { %1333 = vmatprep.subr.bf16.mxu0 %v1467_v2  ;;  %v65_v23 = vshrl.u32 %v1262_v19, 16  ;;  %v68_v24 = vshll.u32 %v1262_v19, 16  ;;  %v74_v25 = vshrl.u32 %v1263_v20, 16  ;;  %v77_v26 = vshll.u32 %v1263_v20, 16  ;;  %vm1666_vm11 = vmor %vm134_vm9, %vm135_vm10 }
   0x9   :  { %v59_v28 = vrot.slane %v57_v21, 7  ;;  %v82_v37 = vshrl.u32 %v1264_v29, 16  ;;  %v85_v38 = vshll.u32 %v1264_v29, 16  ;;  %vm1705_vm14 = vmor %vm422_vm12, %vm423_vm13  ;;  %v1502_v21 = vld [vmem:[%s1895_s3 + $0x10] sm:$0xff]  }
   0xa   :  { %v67_v30 = vrot.slane %v65_v23, 7  ;;  %v76_v31 = vrot.slane %v74_v25, 7 }
   0xb   :  { %1334 = vmatpush3.bf16.msra.mxu0 %v1467_v2  ;;  %v62_v35 = vor.u32 %v60_v22, %v59_v28  ;;  %v63_v36 = vrot.slane %v59_v28, 4  ;;  %v98_v42 = vld [vmem:[#allocation2] sm:$0xf]  ;;  %v105_v43 = vld [vmem:[#allocation2 + $0xc] sm:$0xf]  ;;  %v84_v47 = vrot.slane %v82_v37, 7 }
   0xc   :  { %1335 = vmatprep.subr.bf16.mxu0 %v1468_v4  ;;  %v70_v39 = vor.u32 %v68_v24, %v67_v30  ;;  %v72_v40 = vrot.slane %v67_v30, 4  ;;  %v79_v41 = vor.u32 %v77_v26, %v76_v31  ;;  %v102_v45 = vld [vmem:[#allocation2 + $0x8] sm:$0x1]  ;;  %v80_v46 = vrot.slane %v76_v31, 4  ;;  %v1473_v2 = vld [vmem:[%s1893_s1] sm:$0xff]  }
   0xd   :  { %v99_v44 = vsel %vm1610_vm7, %v62_v35, %v98_v42  ;;  %v109_v48 = vld [vmem:[#allocation2 + $0x14] sm:$0x1]  ;;  %v87_v53 = vor.u32 %v85_v38, %v84_v47  ;;  %v89_v54 = vrot.slane %v84_v47, 4  ;;  %v1477_v47 = vld [vmem:[%s1893_s1 + $0x20] sm:$0xff]  }
   0xe   :  { %v71_v49 = vsel %vm1619_vm8, %v63_v36, %v70_v39  ;;  %100 = vst [vmem:[#allocation2] sm:$0xf] %v99_v44  ;;  %v103_v50 = vsel %vm1560_vm2, %v72_v40, %v102_v45  ;;  %v106_v51 = vsel %vm1610_vm7, %v79_v41, %v105_v43  ;;  %v1474_v44 = vld [vmem:[%s1893_s1 + $0x8] sm:$0xff]   ;;  %v1475_v45 = vld [vmem:[%s1893_s1 + $0x10] sm:$0xff]  }
   0xf   :  { %1336 = vmatpush3.bf16.msra.mxu0 %v1468_v4  ;;  %101 = vst [vmem:[#allocation2 + $0x4] sm:$0xf] %v71_v49  ;;  %104 = vst [vmem:[#allocation2 + $0x8] sm:$0x1] %v103_v50  ;;  %v88_v55 = vsel %vm1619_vm8, %v80_v46, %v87_v53  ;;  %v110_v56 = vsel %vm1560_vm2, %v89_v54, %v109_v48  ;;  %v1476_v46 = vld [vmem:[%s1893_s1 + $0x18] sm:$0xff]   ;;  %v1478_v48 = vld [vmem:[%s1893_s1 + $0x28] sm:$0xff]  }
  0x10   :  { %1337 = vmatprep.subr.bf16.mxu0 %v1469_v18  ;;  %107 = vst [vmem:[#allocation2 + $0xc] sm:$0xf] %v106_v51  ;;  %108 = vst [vmem:[#allocation2 + $0x10] sm:$0xf] %v88_v55  ;;  %v1479_v49 = vld [vmem:[%s1893_s1 + $0x30] sm:$0xff]  }
  0x11   :  { %111 = vst [vmem:[#allocation2 + $0x14] sm:$0x1] %v110_v56  ;;  %v1512_v56 = vld [vmem:[%s1895_s3 + $0x98] sm:$0xff]  }
  0x13   :  { %1338 = vmatpush3.bf16.msra.mxu0 %v1469_v18 }
  0x14   :  { %1339 = vmatprep.subr.bf16.mxu0 %v1470_v33 }
  0x15   :  { %v1641_v58 = vld [vmem:[#allocation2] sm:$0xf] }
  0x16   :  { %v1643_v59 = vld [vmem:[#allocation2 + $0x4] sm:$0xf]  ;;  %v1645_v60 = vld [vmem:[#allocation2 + $0x8] sm:$0x1]  ;;  %v138_v61 = vshrl.u32 %v1641_v58, 16  ;;  %v141_v62 = vshll.u32 %v1641_v58, 16 }
  0x17   :  { %1340 = vmatpush3.bf16.msra.mxu0 %v1470_v33  ;;  %v147_v63 = vshll.u32 %v1643_v59, 16  ;;  %v151_v0 = vshrl.u32 %v1643_v59, 16  ;;  %v157_v1 = vshll.u32 %v1645_v60, 16  ;;  %v1655_v3 = vld [vmem:[#allocation2 + $0xc] sm:$0xf]  ;;  %v1153_v42 = vcombine.low %v1641_v58, %v1643_v59 }
  0x18   :  { %1341 = vmatprep.subr.bf16.mxu0 %v1471_v52  ;;  %v140_v4 = vrot.slane %v138_v61, 4  ;;  %v143_v6 = vrot.slane %v141_v62, 5  ;;  %v162_v7 = vshrl.u32 %v1655_v3, 16  ;;  %v165_v8 = vshll.u32 %v1655_v3, 16  ;;  %v1659_v13 = vld [vmem:[#allocation2 + $0x10] sm:$0xf] }
  0x19   :  { %v149_v9 = vrot.slane %v147_v63, 5  ;;  %v153_v10 = vrot.slane %v151_v0, 4  ;;  %v159_v11 = vrot.slane %v157_v1, 5  ;;  %v1661_v17 = vld [vmem:[#allocation2 + $0x14] sm:$0x1]  ;;  %v171_v20 = vshll.u32 %v1659_v13, 16 }
  0x1a   :  { %v144_v14 = vor.u32 %v143_v6, %v140_v4  ;;  %v164_v18 = vrot.slane %v162_v7, 4  ;;  %v167_v19 = vrot.slane %v165_v8, 5  ;;  %v175_v23 = vshrl.u32 %v1659_v13, 16  ;;  %v416_v51 = vld [vmem:[#allocation2] sm:$0xe]  ;;  %v1484_v63 = vld [vmem:[%s1893_s1 + $0x88] sm:$0xff]  }
  0x1b   :  { %1342 = vmatpush3.bf16.msra.mxu0 %v1471_v52  ;;  %v154_v22 = vor.u32 %v153_v10, %v149_v9  ;;  %v181_v24 = vshll.u32 %v1661_v17, 16  ;;  %v173_v28 = vrot.slane %v171_v20, 5  ;;  %v427_v50 = vrot.slane %v1643_v59, 5  ;;  %v1480_v52 = vld [vmem:[%s1893_s1 + $0x38] sm:$0xff]   ;;  %v1485_v0 = vld [vmem:[%s1893_s1 + $0x90] sm:$0xff]  }
  0x1c   :  { %1343 = vmatprep.subr.bf16.mxu0 %v1472_v57  ;;  %v145_v25 = vrot.slane %v144_v14, 4  ;;  %v168_v26 = vor.u32 %v167_v19, %v164_v18  ;;  %v177_v30 = vrot.slane %v175_v23, 4  ;;  %v1163_v53 = vrot.slane %v416_v51, 9  ;;  %v1486_v1 = vld [vmem:[%s1893_s1 + $0x98] sm:$0xff]   ;;  %v1489_v6 = vld [vmem:[%s1893_s1 + $0xb0] sm:$0xff]   ;;  %v1492_v19 = vld [vmem:[%s1895_s3 + $0x48] sm:$0xff]  }
  0x1d   :  { %v155_v29 = vrot.slane %v154_v22, 4  ;;  %v183_v37 = vrot.slane %v181_v24, 5  ;;  %v429_v54 = vrot.slane %v427_v50, 4  ;;  %v430_v55 = vrot.slane %v1645_v60, 5  ;;  %v417_v7 = vld [vmem:[#allocation2 + $0xc] sm:$0xe] }
  0x1e   :  { %v150_v31 = vsel %vm1666_vm11, %v145_v25, %v149_v9  ;;  %v169_v33 = vrot.slane %v168_v26, 4  ;;  %v178_v36 = vor.u32 %v177_v30, %v173_v28  ;;  %v428_v59 = vsel %vm1705_vm14, %v1163_v53, %v427_v50  ;;  %v1493_v20 = vld [vmem:[%s1895_s3 + $0x50] sm:$0xff]   ;;  %v1494_v22 = vld [vmem:[%s1895_s3 + $0x58] sm:$0xff]   ;;  %v1495_v23 = vld [vmem:[%s1895_s3 + $0x60] sm:$0xff]  }
  0x1f   :  { %1344 = vmatpush3.bf16.msra.mxu0 %v1472_v57  ;;  %v160_v35 = vsel %vm1666_vm11, %v155_v29, %v159_v11  ;;  %v1482_v57 = vld [vmem:[%s1893_s1 + $0x80] sm:$0xff]   ;;  %v431_v61 = vsel %vm1705_vm14, %v429_v54, %v430_v55  ;;  %v1154_v62 = vcombine.low %v1655_v3, %v1659_v13  ;;  %v1488_v3 = vld [vmem:[%s1893_s1 + $0xa8] sm:$0xff]   ;;  %v434_v4 = vrot.slane %v1659_v13, 5  ;;  %v1490_v11 = vld [vmem:[%s1893_s1 + $0xb8] sm:$0xff]  }
  0x20   :  { %1349 = vmatprep.subr.bf16.mxu0 %v1473_v2  ;;  %v1143_v38 = vcombine.low %v150_v31, %v160_v35  ;;  %v174_v39 = vsel %vm1666_vm11, %v169_v33, %v173_v28  ;;  %v179_v40 = vrot.slane %v178_v36, 4  ;;  %v1181_v60 = vcombine.low %v428_v59, %v431_v61  ;;  %v1496_v24 = vld [vmem:[%s1895_s3 + $0x68] sm:$0xff]   ;;  %v1497_v25 = vld [vmem:[%s1895_s3 + $0x70] sm:$0xff]   ;;  %v1498_v26 = vld [vmem:[%s1895_s3 + $0x78] sm:$0xff]  }
  0x21   :  { %v1164_v8 = vrot.slane %v417_v7, 9  ;;  %v436_v9 = vrot.slane %v434_v4, 4  ;;  %v437_v10 = vrot.slane %v1661_v17, 5  ;;  %v1491_v17 = vld [vmem:[%s1895_s3 + $0x40] sm:$0xff]   ;;  %v646_v59 = vld [vmem:[#allocation2 + $0xc] sm:$0xf] }
  0x22   :  { %1345 = vmatprep.mubr.bf16.mxu0 %v1143_v38  ;;  %v184_v41 = vsel %vm1666_vm11, %v179_v40, %v183_v37  ;;  %1389 = vmatprep.subr.bf16.mxu1 %v1491_v17  ;;  %v1772_v28 = vld [vmem:[%s1895_s3] sm:$0xff]  }
  0x23   :  { %v1144_v43 = vcombine.low %v174_v39, %v184_v41  ;;  %v435_v13 = vsel %vm1705_vm14, %v1164_v8, %v434_v4  ;;  %v438_v14 = vsel %vm1705_vm14, %v436_v9, %v437_v10  ;;  %1390 = vmatpush3.bf16.msra.mxu1 %v1491_v17  ;;  %v1191_v29 = vld [vmem:[%s1896_s2] ss:$0 sm:$0xff] }
  0x24   :  { %v1182_v18 = vcombine.low %v435_v13, %v438_v14  ;;  %1391 = vmatprep.subr.bf16.mxu1 %v1492_v19 }
  0x25   :  { %1346 = vmatmul.mubr.bf16.vlgmr.msra.gmra.mrb[0].mxu0 %v1144_v43 }
  0x26   :  { %1350 = vmatpush3.bf16.msra.mxu0 %v1473_v2  ;;  %1365 = vmatprep.mubr.bf16.mxu0 %v1153_v42  ;;  %v1487_v2 = vld [vmem:[%s1893_s1 + $0xa0] sm:$0xff]  }
  0x27   :  { %1351 = vmatprep.subr.bf16.mxu0 %v1474_v44  ;;  %1392 = vmatpush3.bf16.msra.mxu1 %v1492_v19 }
  0x28   :  { %1393 = vmatprep.subr.bf16.mxu1 %v1493_v20 }
  0x2a   :  { %1352 = vmatpush3.bf16.msra.mxu0 %v1474_v44 }
  0x2b   :  { %1353 = vmatprep.subr.bf16.mxu0 %v1475_v45  ;;  %1394 = vmatpush3.bf16.msra.mxu1 %v1493_v20 }
  0x2c   :  { %1395 = vmatprep.subr.bf16.mxu1 %v1494_v22 }
  0x2e   :  { %1354 = vmatpush3.bf16.msra.mxu0 %v1475_v45 }
  0x2f   :  { %1355 = vmatprep.subr.bf16.mxu0 %v1476_v46  ;;  %1396 = vmatpush3.bf16.msra.mxu1 %v1494_v22 }
  0x30   :  { %1397 = vmatprep.subr.bf16.mxu1 %v1495_v23 }
  0x32   :  { %1356 = vmatpush3.bf16.msra.mxu0 %v1476_v46 }
  0x33   :  { %1357 = vmatprep.subr.bf16.mxu0 %v1477_v47  ;;  %1398 = vmatpush3.bf16.msra.mxu1 %v1495_v23 }
  0x34   :  { %1399 = vmatprep.subr.bf16.mxu1 %v1496_v24 }
  0x36   :  { %1358 = vmatpush3.bf16.msra.mxu0 %v1477_v47 }
  0x37   :  { %1359 = vmatprep.subr.bf16.mxu0 %v1478_v48  ;;  %1400 = vmatpush3.bf16.msra.mxu1 %v1496_v24 }
  0x38   :  { %1401 = vmatprep.subr.bf16.mxu1 %v1497_v25 }
  0x3a   :  { %1360 = vmatpush3.bf16.msra.mxu0 %v1478_v48 }
  0x3b   :  { %1361 = vmatprep.subr.bf16.mxu0 %v1479_v49  ;;  %1402 = vmatpush3.bf16.msra.mxu1 %v1497_v25 }
  0x3c   :  { %1403 = vmatprep.subr.bf16.mxu1 %v1498_v26 }
  0x3e   :  { %1362 = vmatpush3.bf16.msra.mxu0 %v1479_v49 }
  0x3f   :  { %1363 = vmatprep.subr.bf16.mxu0 %v1480_v52  ;;  %1404 = vmatpush3.bf16.msra.mxu1 %v1498_v26 }
  0x40   :  { %1409 = vmatprep.subr.bf16.mxu1 %v1772_v28 }
  0x42   :  { %1364 = vmatpush3.bf16.msra.mxu0 %v1480_v52 }
  0x43   :  { %1369 = vmatprep.subr.bf16.mxu0 %v1482_v57 }
  0x45   :  { %1366 = vmatmul.mubr.bf16.vlgmr.msra.gmra.mrb[0].mxu0 %v1154_v62 }
  0x46   :  { %1370 = vmatpush3.bf16.msra.mxu0 %v1482_v57  ;;  %1385 = vmatprep.mubr.bf16.mxu0 %v1181_v60 }
  0x47   :  { %1371 = vmatprep.subr.bf16.mxu0 %v1484_v63 }
  0x4a   :  { %1372 = vmatpush3.bf16.msra.mxu0 %v1484_v63 }
  0x4b   :  { %1373 = vmatprep.subr.bf16.mxu0 %v1485_v0 }
  0x4e   :  { %1374 = vmatpush3.bf16.msra.mxu0 %v1485_v0 }
  0x4f   :  { %1375 = vmatprep.subr.bf16.mxu0 %v1486_v1 }
  0x52   :  { %1376 = vmatpush3.bf16.msra.mxu0 %v1486_v1 }
  0x53   :  { %1377 = vmatprep.subr.bf16.mxu0 %v1487_v2 }
  0x56   :  { %1378 = vmatpush3.bf16.msra.mxu0 %v1487_v2 }
  0x57   :  { %1379 = vmatprep.subr.bf16.mxu0 %v1488_v3 }
  0x5a   :  { %1380 = vmatpush3.bf16.msra.mxu0 %v1488_v3  ;;  %v650_v3 = vld [vmem:[#allocation2 + $0x14] sm:$0x1] }
  0x5b   :  { %1381 = vmatprep.subr.bf16.mxu0 %v1489_v6 }
  0x5e   :  { %1382 = vmatpush3.bf16.msra.mxu0 %v1489_v6 }
  0x5f   :  { %1383 = vmatprep.subr.bf16.mxu0 %v1490_v11 }
  0x62   :  { %1384 = vmatpush3.bf16.msra.mxu0 %v1490_v11  ;;  %v643_v11 = vld [vmem:[#allocation2 + $0x8] sm:$0x1] }
  0x65   :  { %1386 = vmatmul.mubr.bf16.vlgmr.msra.gmra.mrb[0].mxu0 %v1182_v18 }
 0x138   :  { %v1387_v30 = vpop.f32.mrb[0].mxu0 }
 0x139   :  { %v574_v31 = vadd.f32 %v1387_v30, %v1191_v29  ;;  %v546_v33 = vpop.f32.mrb[1].mxu0 }
 0x13a   :  { %v572_v35 = vadd.f32 %v1191_v29, %v546_v33  ;;  %v1388_v36 = vpop.f32.mrb[2].mxu0 }
 0x13b   :  { %vm578_vm15 = vcmp.gt.f32.partialorder %v574_v31, 0.0  ;;  %v582_v37 = vmul.f32 0.01, %v574_v31  ;;  %v575_v38 = vadd.f32 %v1388_v36, %v1191_v29  ;;  %v549_v39 = vpop.f32.mrb[3].mxu0 }
 0x13c   :  { %vm576_vm0 = vcmp.gt.f32.partialorder %v572_v35, 0.0  ;;  %v580_v40 = vmul.f32 0.01, %v572_v35  ;;  %v573_v41 = vadd.f32 %v1191_v29, %v549_v39 }
 0x13d   :  { %v586_v42 = vsel %vm578_vm15, %v574_v31, %v582_v37  ;;  %vm579_vm1 = vcmp.gt.f32.partialorder %v575_v38, 0.0  ;;  %v583_v43 = vmul.f32 0.01, %v575_v38 }
 0x13e   :  { %v1267_v44 = vpack.c.bf16 %v586_v42, %v586_v42  ;;  %v584_v45 = vsel %vm576_vm0, %v572_v35, %v580_v40  ;;  %vm577_vm3 = vcmp.gt.f32.partialorder %v573_v41, 0.0  ;;  %v581_v46 = vmul.f32 0.01, %v573_v41 }
 0x13f   :  { %v1265_v47 = vpack.c.bf16 %v584_v45, %v584_v45  ;;  %v587_v48 = vsel %vm579_vm1, %v575_v38, %v583_v43 }
 0x140   :  { %v618_v49 = vshrl.u32 %v1267_v44, 16  ;;  %v1268_v50 = vpack.c.bf16 %v587_v48, %v587_v48  ;;  %v585_v51 = vsel %vm577_vm3, %v573_v41, %v581_v46  ;;  %v621_v55 = vshll.u32 %v1267_v44, 16 }
 0x141   :  { %v601_v52 = vshrl.u32 %v1265_v47, 16  ;;  %v1266_v53 = vpack.c.bf16 %v585_v51, %v585_v51  ;;  %v604_v62 = vshll.u32 %v1265_v47, 16 }
 0x142   :  { %v620_v54 = vrot.slane %v618_v49, 7  ;;  %v626_v57 = vshrl.u32 %v1268_v50, 16  ;;  %v629_v1 = vshll.u32 %v1268_v50, 16 }
 0x143   :  { %v603_v61 = vrot.slane %v601_v52, 7  ;;  %v609_v60 = vshrl.u32 %v1266_v53, 16  ;;  %v612_v6 = vshll.u32 %v1266_v53, 16 }
 0x144   :  { %v623_v63 = vor.u32 %v621_v55, %v620_v54  ;;  %v628_v0 = vrot.slane %v626_v57, 7  ;;  %v624_v7 = vrot.slane %v620_v54, 4 }
 0x145   :  { %v606_v2 = vor.u32 %v604_v62, %v603_v61  ;;  %v611_v4 = vrot.slane %v609_v60, 7  ;;  %v607_v13 = vrot.slane %v603_v61, 4 }
 0x146   :  { %v647_v8 = vsel %vm1610_vm7, %v623_v63, %v646_v59  ;;  %v631_v9 = vor.u32 %v629_v1, %v628_v0  ;;  %v633_v10 = vrot.slane %v628_v0, 4 }
 0x147   :  { %648 = vst [vmem:[#allocation2 + $0xc] sm:$0xf] %v647_v8  ;;  %v640_v14 = vsel %vm1610_vm7, %v606_v2, %v1641_v58  ;;  %v614_v18 = vor.u32 %v612_v6, %v611_v4  ;;  %v616_v17 = vrot.slane %v611_v4, 4  ;;  %v1501_v8 = vld [vmem:[%s1895_s3 + $0x8] sm:$0xff]  }
 0x148   :  { %641 = vst [vmem:[#allocation2] sm:$0xf] %v640_v14  ;;  %v632_v19 = vsel %vm1619_vm8, %v624_v7, %v631_v9  ;;  %v651_v20 = vsel %vm1560_vm2, %v633_v10, %v650_v3  ;;  %v1503_v14 = vld [vmem:[%s1895_s3 + $0x18] sm:$0xff]  }
 0x149   :  { %649 = vst [vmem:[#allocation2 + $0x10] sm:$0xf] %v632_v19  ;;  %652 = vst [vmem:[#allocation2 + $0x14] sm:$0x1] %v651_v20  ;;  %v615_v22 = vsel %vm1619_vm8, %v607_v13, %v614_v18  ;;  %v644_v23 = vsel %vm1560_vm2, %v616_v17, %v643_v11  ;;  %v1504_v18 = vld [vmem:[%s1895_s3 + $0x20] sm:$0xff]   ;;  %v1506_v17 = vld [vmem:[%s1895_s3 + $0x30] sm:$0xff]  }
 0x14a   :  { %642 = vst [vmem:[#allocation2 + $0x4] sm:$0xf] %v615_v22  ;;  %645 = vst [vmem:[#allocation2 + $0x8] sm:$0x1] %v644_v23  ;;  %v1507_v20 = vld [vmem:[%s1895_s3 + $0x38] sm:$0xff]  }
 0x14e   :  { %v1791_v32 = vld [vmem:[#allocation2 + $0xc] sm:$0xf] }
 0x14f   :  { %v653_v58 = vld [vmem:[#allocation2] sm:$0xf]  ;;  %v700_v24 = vshrl.u32 %v1791_v32, 16  ;;  %v703_v25 = vshll.u32 %v1791_v32, 16  ;;  %v955_v57 = vld [vmem:[#allocation2 + $0xc] sm:$0xe] }
 0x150   :  { %v676_v26 = vshrl.u32 %v653_v58, 16  ;;  %v679_v29 = vshll.u32 %v653_v58, 16  ;;  %v1795_v30 = vld [vmem:[#allocation2 + $0x10] sm:$0xf]  ;;  %v674_v40 = vld [vmem:[#allocation2 + $0x14] sm:$0x1] }
 0x151   :  { %v1797_v31 = vld [vmem:[#allocation2 + $0x4] sm:$0xf]  ;;  %v1799_v34 = vld [vmem:[#allocation2 + $0x8] sm:$0x1]  ;;  %v702_v33 = vrot.slane %v700_v24, 4  ;;  %v705_v5 = vrot.slane %v703_v25, 5 }
 0x152   :  { %v678_v35 = vrot.slane %v676_v26, 4  ;;  %v681_v36 = vrot.slane %v679_v29, 5  ;;  %v685_v37 = vshll.u32 %v1797_v31, 16  ;;  %v689_v38 = vshrl.u32 %v1797_v31, 16  ;;  %v954_v23 = vld [vmem:[#allocation2] sm:$0xe] }
 0x153   :  { %v695_v39 = vshll.u32 %v1799_v34, 16  ;;  %v706_v41 = vor.u32 %v705_v5, %v702_v33  ;;  %v709_v42 = vshll.u32 %v1795_v30, 16  ;;  %v713_v46 = vshrl.u32 %v1795_v30, 16  ;;  %v1509_v24 = vld [vmem:[%s1895_s3 + $0x80] sm:$0xff]   ;;  %v1511_v5 = vld [vmem:[%s1895_s3 + $0x90] sm:$0xff]  }
 0x154   :  { %v682_v43 = vor.u32 %v681_v36, %v678_v35  ;;  %v687_v44 = vrot.slane %v685_v37, 5  ;;  %v691_v45 = vrot.slane %v689_v38, 4  ;;  %v719_v51 = vshll.u32 %v674_v40, 16  ;;  %v1515_v35 = vld [vmem:[%s1895_s3 + $0xb0] sm:$0xff]   ;;  %v1516_v36 = vld [vmem:[%s1895_s3 + $0xb8] sm:$0xff]  }
 0x155   :  { %v711_v47 = vrot.slane %v709_v42, 5  ;;  %v715_v50 = vrot.slane %v713_v46, 4  ;;  %v697_v53 = vrot.slane %v695_v39, 5  ;;  %v707_v54 = vrot.slane %v706_v41, 4  ;;  %v1260_v37 = vld [vmem:[%s1897_s4] ss:$0 sm:$0xff] }
 0x156   :  { %v683_v48 = vrot.slane %v682_v43, 4  ;;  %v692_v49 = vor.u32 %v691_v45, %v687_v44  ;;  %v969_v59 = vrot.slane %v1795_v30, 5  ;;  %v721_v63 = vrot.slane %v719_v51, 5 }
 0x157   :  { %v716_v55 = vor.u32 %v715_v50, %v711_v47  ;;  %v972_v1 = vrot.slane %v674_v40, 5  ;;  %v1233_v2 = vrot.slane %v955_v57, 9  ;;  %v712_v4 = vsel %vm1666_vm11, %v707_v54, %v711_v47 }
 0x158   :  { %v693_v52 = vrot.slane %v692_v49, 4  ;;  %v688_v61 = vsel %vm1666_vm11, %v683_v48, %v687_v44  ;;  %v971_v3 = vrot.slane %v969_v59, 4  ;;  %v1222_v11 = vcombine.low %v653_v58, %v1797_v31 }
 0x159   :  { %v717_v60 = vrot.slane %v716_v55, 4  ;;  %v970_v9 = vsel %vm1705_vm14, %v1233_v2, %v969_v59  ;;  %v962_v19 = vrot.slane %v1797_v31, 5  ;;  %v965_v58 = vrot.slane %v1799_v34, 5  ;;  %v1510_v34 = vld [vmem:[%s1895_s3 + $0x88] sm:$0xff]  }
 0x15a   :  { %v698_v62 = vsel %vm1666_vm11, %v693_v52, %v697_v53  ;;  %v973_v10 = vsel %vm1705_vm14, %v971_v3, %v972_v1  ;;  %v1232_v25 = vrot.slane %v954_v23, 9  ;;  %v1223_v29 = vcombine.low %v1791_v32, %v1795_v30  ;;  %v1513_v32 = vld [vmem:[%s1895_s3 + $0xa0] sm:$0xff]   ;;  %v1514_v30 = vld [vmem:[%s1895_s3 + $0xa8] sm:$0xff]  }
 0x15b   :  { %v1212_v0 = vcombine.low %v688_v61, %v698_v62  ;;  %v722_v6 = vsel %vm1666_vm11, %v717_v60, %v721_v63  ;;  %v1251_v13 = vcombine.low %v970_v9, %v973_v10  ;;  %v964_v22 = vrot.slane %v962_v19, 4 }
 0x15c   :  { %v1213_v7 = vcombine.low %v712_v4, %v722_v6  ;;  %v963_v31 = vsel %vm1705_vm14, %v1232_v25, %v962_v19 }
 0x15d   :  { %1405 = vmatprep.mubr.bf16.mxu1 %v1212_v0  ;;  %v966_v26 = vsel %vm1705_vm14, %v964_v22, %v965_v58 }
 0x15e   :  { %1406 = vmatmul.mubr.bf16.vlgmr.msra.gmra.mrb[0].mxu1 %v1213_v7  ;;  %v1250_v33 = vcombine.low %v963_v31, %v966_v26 }
 0x15f   :  { %1410 = vmatpush3.bf16.msra.mxu1 %v1772_v28  ;;  %1425 = vmatprep.mubr.bf16.mxu1 %v1222_v11  ;;  %v1505_v28 = vld [vmem:[%s1895_s3 + $0x28] sm:$0xff]  }
 0x160   :  { %1411 = vmatprep.subr.bf16.mxu1 %v1501_v8 }
 0x163   :  { %1412 = vmatpush3.bf16.msra.mxu1 %v1501_v8 }
 0x164   :  { %1413 = vmatprep.subr.bf16.mxu1 %v1502_v21 }
 0x167   :  { %1414 = vmatpush3.bf16.msra.mxu1 %v1502_v21 }
 0x168   :  { %1415 = vmatprep.subr.bf16.mxu1 %v1503_v14 }
 0x16b   :  { %1416 = vmatpush3.bf16.msra.mxu1 %v1503_v14 }
 0x16c   :  { %1417 = vmatprep.subr.bf16.mxu1 %v1504_v18 }
 0x16f   :  { %1418 = vmatpush3.bf16.msra.mxu1 %v1504_v18 }
 0x170   :  { %1419 = vmatprep.subr.bf16.mxu1 %v1505_v28 }
 0x173   :  { %1420 = vmatpush3.bf16.msra.mxu1 %v1505_v28 }
 0x174   :  { %1421 = vmatprep.subr.bf16.mxu1 %v1506_v17 }
 0x177   :  { %1422 = vmatpush3.bf16.msra.mxu1 %v1506_v17 }
 0x178   :  { %1423 = vmatprep.subr.bf16.mxu1 %v1507_v20 }
 0x17b   :  { %1424 = vmatpush3.bf16.msra.mxu1 %v1507_v20 }
 0x17c   :  { %1429 = vmatprep.subr.bf16.mxu1 %v1509_v24 }
 0x17e   :  { %1426 = vmatmul.mubr.bf16.vlgmr.msra.gmra.mrb[0].mxu1 %v1223_v29 }
 0x17f   :  { %1430 = vmatpush3.bf16.msra.mxu1 %v1509_v24  ;;  %1445 = vmatprep.mubr.bf16.mxu1 %v1250_v33 }
 0x180   :  { %1431 = vmatprep.subr.bf16.mxu1 %v1510_v34 }
 0x183   :  { %1432 = vmatpush3.bf16.msra.mxu1 %v1510_v34 }
 0x184   :  { %1433 = vmatprep.subr.bf16.mxu1 %v1511_v5 }
 0x187   :  { %1434 = vmatpush3.bf16.msra.mxu1 %v1511_v5 }
 0x188   :  { %1435 = vmatprep.subr.bf16.mxu1 %v1512_v56 }
 0x18b   :  { %1436 = vmatpush3.bf16.msra.mxu1 %v1512_v56 }
 0x18c   :  { %1437 = vmatprep.subr.bf16.mxu1 %v1513_v32 }
 0x18f   :  { %1438 = vmatpush3.bf16.msra.mxu1 %v1513_v32 }
 0x190   :  { %1439 = vmatprep.subr.bf16.mxu1 %v1514_v30 }
 0x193   :  { %1440 = vmatpush3.bf16.msra.mxu1 %v1514_v30 }
 0x194   :  { %1441 = vmatprep.subr.bf16.mxu1 %v1515_v35 }
 0x197   :  { %1442 = vmatpush3.bf16.msra.mxu1 %v1515_v35 }
 0x198   :  { %1443 = vmatprep.subr.bf16.mxu1 %v1516_v36 }
 0x19b   :  { %1444 = vmatpush3.bf16.msra.mxu1 %v1516_v36 }
 0x19e   :  { %1446 = vmatmul.mubr.bf16.vlgmr.msra.gmra.mrb[0].mxu1 %v1251_v13 }
 0x271   :  { %v1447_v38 = vpop.f32.mrb[0].mxu1 }
 0x272   :  { %v1109_v39 = vadd.f32 %v1447_v38, %v1260_v37  ;;  %v1081_v40 = vpop.f32.mrb[1].mxu1 }
 0x273   :  { %v1107_v41 = vadd.f32 %v1260_v37, %v1081_v40  ;;  %v1448_v42 = vpop.f32.mrb[2].mxu1 }
 0x274   :  { %v1113_v43 = vadd.f32 %v1109_v39, %v1590_v16  ;;  %v1110_v44 = vadd.f32 %v1448_v42, %v1260_v37  ;;  %v1084_v45 = vpop.f32.mrb[3].mxu1 }
 0x275   :  { %v1111_v46 = vadd.f32 %v1107_v41, %v1576_v12  ;;  %v1108_v47 = vadd.f32 %v1260_v37, %v1084_v45 }
 0x276   :  { %1117 = vst [vmem:[%s1898_s5 + $0x10] sm:$0xff] %v1113_v43  ;;  %v1114_v48 = vadd.f32 %v1110_v44, %v1604_v27 }
 0x277   :  { %1115 = vst [vmem:[%s1898_s5] sm:$0xff] %v1111_v46  ;;  %v1112_v49 = vadd.f32 %v1108_v47, %v1585_v15 }
 0x278   :  { %1118 = vst [vmem:[%s1898_s5 + $0x18] sm:$0xff] %v1114_v48 }
 0x279   :  { %1116 = vst [vmem:[%s1898_s5 + $0x8] sm:$0xff] %v1112_v49 }

</bundles_post_ra>
